<compile_context>
chip_gen: v5e
topology: v5e:2x2
jax: 0.10.0
libtpu: 0.0.40
codegen_flags: <defaults>
</compile_context>

<pallas_src>
import jax
import jax.numpy as jnp
from jax.experimental import pallas as pl
from jax.experimental.pallas import tpu as pltpu

_MIB = 1024 * 1024


def _outconv_kernel(w_ref, b_ref, x_ref, o_ref):
    # w_ref: (C_out, C_in)   resident weight, in x.dtype
    # b_ref: (C_out, 1)      resident bias, f32
    # x_ref: (1, C_in, ts)   streamed lane-dense input slab
    # o_ref: (1, C_out, ts)  streamed lane-dense output slab
    acc = jnp.dot(w_ref[...], x_ref[0], preferred_element_type=jnp.float32)
    o_ref[0] = (acc + b_ref[...]).astype(o_ref.dtype)


def _tpu_vmem_bytes():
    """Per-TensorCore VMEM capacity; defaults to 128 MiB if unavailable."""
    try:
        info = pltpu.get_tpu_info()
        return int(getattr(info, "vmem_capacity_bytes", 128 * _MIB))
    except Exception:
        return 128 * _MIB


def _lane_tile_candidates(hw128):
    """All multiples of 128 that evenly divide hw128, ascending."""
    k = hw128 // 128
    divs = set()
    d = 1
    while d * d <= k:
        if k % d == 0:
            divs.add(d)
            divs.add(k // d)
        d += 1
    return sorted(v * 128 for v in divs)


def outconv(x, weight, bias):
    """1x1 Conv2d forward.

    x:      (N, C_in, H, W)
    weight: (C_out, C_in, 1, 1)   (PyTorch Conv2d layout)
    bias:   (C_out,)
    returns (N, C_out, H, W)
    """
    n, cin, h, w = x.shape
    cout = weight.shape[0]
    hw = h * w
    hw128 = ((hw + 127) // 128) * 128        # pad spatial axis to lane multiple

    in_b = x.dtype.itemsize                  # dtype-aware streaming bytes
    out_b = in_b                             # output matches input dtype
    bias_b = 4                               # bias held in f32

    vmem = _tpu_vmem_bytes()
    small_vmem = vmem <= 64 * _MIB           # v7x-class: 64 MiB/TC, 2 TCs/chip
    budget = (12 * _MIB) if small_vmem else (24 * _MIB)

    # Double-buffered streaming footprint per lane of the HW axis.
    per_lane = 2 * (cin * in_b + cout * out_b)
    cands = _lane_tile_candidates(hw128)
    fits = [t for t in cands if t * per_lane <= budget] or [cands[0]]
    ts = fits[-1]

    if small_vmem:
        # Two TensorCores per chip: make sure the parallel grid has enough
        # steps for megacore sharding to keep both cores (and their HBM
        # bandwidth) busy.  Harmless elsewhere, so gated on chip class.
        max_steps = n * (hw128 // 128)
        target = min(4, max_steps)
        for t in reversed(fits):
            if n * (hw128 // t) >= target:
                ts = t
                break

    # Lane-dense layout + padding (zeros; padded lanes are sliced off below).
    x3 = x.reshape(n, cin, hw)
    if hw128 != hw:
        x3 = jnp.pad(x3, ((0, 0), (0, 0), (0, hw128 - hw)))
    w2 = weight.reshape(cout, cin).astype(x.dtype)   # pre-cast: pure dot in body
    b2 = bias.reshape(cout, 1).astype(jnp.float32)   # pre-cast: pure add in body

    grid = (n, hw128 // ts)

    # Derive vmem_limit from the actual footprint, capped per generation so
    # Mosaic internal scratch keeps headroom (v7x scoped default is 32 MiB).
    footprint = per_lane * ts + cout * cin * in_b + cout * bias_b
    gen_cap = (32 * _MIB) if small_vmem else (64 * _MIB)
    vmem_limit = int(min(gen_cap, max(16 * _MIB, 2 * footprint + 2 * _MIB)))

    cost = pl.CostEstimate(
        flops=2 * n * hw * cin * cout,
        transcendentals=0,
        bytes_accessed=(n * hw * (cin * in_b + cout * out_b)
                        + cout * cin * in_b + cout * bias_b),
    )

    out3 = pl.pallas_call(
        _outconv_kernel,
        out_shape=jax.ShapeDtypeStruct((n, cout, hw128), x.dtype),
        grid_spec=pltpu.PrefetchScalarGridSpec(
            num_scalar_prefetch=0,
            grid=grid,
            in_specs=[
                pl.BlockSpec((cout, cin), lambda i, s: (0, 0)),  # weight (resident)
                pl.BlockSpec((cout, 1), lambda i, s: (0, 0)),    # bias   (resident)
                pl.BlockSpec((1, cin, ts), lambda i, s: (i, 0, s)),
            ],
            out_specs=pl.BlockSpec((1, cout, ts), lambda i, s: (i, 0, s)),
        ),
        compiler_params=pltpu.CompilerParams(
            dimension_semantics=("parallel", "parallel"),
            vmem_limit_bytes=vmem_limit,
        ),
        cost_estimate=cost,
    )(w2, b2, x3)

    if hw128 != hw:
        out3 = out3[:, :, :hw]
    return out3.reshape(n, cout, h, w)


def _reference(x, weight, bias):
    w2 = weight.reshape(weight.shape[0], weight.shape[1])
    out = jnp.einsum("oi,nihw->nohw", w2, x)
    return out + bias.reshape(1, -1, 1, 1)


if __name__ == "__main__":
    key = jax.random.PRNGKey(0)
    kx, kw, kb = jax.random.split(key, 3)

    n, cin, cout, hs = 2, 4, 4, 16
    x = jax.random.normal(kx, (n, cin, hs, hs), dtype=jnp.float32)
    weight = jax.random.normal(kw, (cout, cin, 1, 1), dtype=jnp.float32) * 0.1
    bias = jax.random.normal(kb, (cout,), dtype=jnp.float32) * 0.1

    out = outconv(x, weight, bias)
    out = jax.block_until_ready(out)

    ref = _reference(x, weight, bias)
    assert out.shape == (n, cout, hs, hs), out.shape
    assert jnp.allclose(out, ref, atol=1e-5, rtol=1e-5), "mismatch vs reference"

    # Also exercise the padded path (unaligned spatial size) for robustness.
    x_odd = jax.random.normal(kx, (1, cin, 9, 13), dtype=jnp.float32)
    out_odd = jax.block_until_ready(outconv(x_odd, weight, bias))
    assert jnp.allclose(out_odd, _reference(x_odd, weight, bias),
                        atol=1e-5, rtol=1e-5), "mismatch on unaligned spatial size"

    print("KERNEL_OK")
</pallas_src>

<mosaic_0001>
module attributes {stable_mosaic.version = 11 : i64} {
  func.func @_outconv_kernel(%arg0: i32, %arg1: i32, %arg2: memref<4x4xf32, #tpu.memory_space<vmem>>, %arg3: memref<4x1xf32, #tpu.memory_space<vmem>>, %arg4: memref<1x4x256xf32, #tpu.memory_space<vmem>>, %arg5: memref<1x4x256xf32, #tpu.memory_space<vmem>>) attributes {dimension_semantics = [#tpu.dimension_semantics<parallel>, #tpu.dimension_semantics<parallel>], iteration_bounds = array<i64: 2, 1>, scalar_prefetch = 0 : i64, scratch_operands = 0 : i64, tpu.core_type = #tpu.core_type<tc>, window_params = [{pipeline_mode = #tpu.pipeline_mode<synchronous>, transform_indices = @transform_0, window_bounds = array<i64: 4, 4>}, {pipeline_mode = #tpu.pipeline_mode<synchronous>, transform_indices = @transform_1, window_bounds = array<i64: 4, 1>}, {transform_indices = @transform_2, window_bounds = array<i64: 1, 4, 256>}, {transform_indices = @transform_3, window_bounds = array<i64: 1, 4, 256>}]} {
    %c0 = arith.constant 0 : index
    %c0_0 = arith.constant 0 : index
    %0 = vector.load %arg2[%c0, %c0_0] : memref<4x4xf32, #tpu.memory_space<vmem>>, vector<4x4xf32>
    %c0_1 = arith.constant 0 : index
    %c0_2 = arith.constant 0 : index
    %c0_3 = arith.constant 0 : index
    %1 = vector.load %arg4[%c0_1, %c0_2, %c0_3] : memref<1x4x256xf32, #tpu.memory_space<vmem>>, vector<1x4x256xf32>
    %2 = vector.shape_cast %1 : vector<1x4x256xf32> to vector<4x256xf32>
    %cst = arith.constant dense<0.000000e+00> : vector<4x256xf32>
    %3 = tpu.matmul %0, %2, %cst {dimension_numbers = #tpu.dot_dimension_numbers<[1], [0], [0], [1], [0, 0, 1, 1], [], []>} : vector<4x4xf32>, vector<4x256xf32>, vector<4x256xf32> -> vector<4x256xf32>
    %c0_4 = arith.constant 0 : index
    %c0_5 = arith.constant 0 : index
    %4 = vector.load %arg3[%c0_4, %c0_5] : memref<4x1xf32, #tpu.memory_space<vmem>>, vector<4x1xf32>
    %5 = vector.broadcast %4 : vector<4x1xf32> to vector<4x256xf32>
    %6 = arith.addf %3, %5 : vector<4x256xf32>
    %c0_6 = arith.constant 0 : index
    %c0_7 = arith.constant 0 : index
    %c0_8 = arith.constant 0 : index
    %7 = vector.load %arg5[%c0_6, %c0_7, %c0_8] : memref<1x4x256xf32, #tpu.memory_space<vmem>>, vector<1x4x256xf32>
    %8 = vector.shape_cast %7 : vector<1x4x256xf32> to vector<4x256xf32>
    %9 = vector.shape_cast %6 : vector<4x256xf32> to vector<1x4x256xf32>
    tpu.vector_store %arg5[%c0_6, %c0_7, %c0_8], %9 {strides = array<i32>} : memref<1x4x256xf32, #tpu.memory_space<vmem>>, vector<1x4x256xf32>,
    return
  }
  func.func @transform_0(%arg0: i32, %arg1: i32) -> (i32, i32) {
    %c0_i32 = arith.constant 0 : i32
    %c0_i32_0 = arith.constant 0 : i32
    %c0_i32_1 = arith.constant 0 : i32
    return %c0_i32, %c0_i32_0 : i32, i32
  }
  func.func @transform_1(%arg0: i32, %arg1: i32) -> (i32, i32) {
    %c0_i32 = arith.constant 0 : i32
    %c0_i32_0 = arith.constant 0 : i32
    %c0_i32_1 = arith.constant 0 : i32
    return %c0_i32, %c0_i32_0 : i32, i32
  }
  func.func @transform_2(%arg0: i32, %arg1: i32) -> (i32, i32, i32) {
    %c0_i32 = arith.constant 0 : i32
    %c0_i32_0 = arith.constant 0 : i32
    return %arg0, %c0_i32, %arg1 : i32, i32, i32
  }
  func.func @transform_3(%arg0: i32, %arg1: i32) -> (i32, i32, i32) {
    %c0_i32 = arith.constant 0 : i32
    %c0_i32_0 = arith.constant 0 : i32
    return %arg0, %c0_i32, %arg1 : i32, i32, i32
  }
}

</mosaic_0001>

<bundles_post_ra>
// kernel: tpu_custom_call.1
= control target key start
LH: loop header
LB: loop body
LE: loop exit
PB: predicated region body
PF: predicated region fallthrough
CT: control target
= control target key end

     0   :  { %8 = vsyncpa [#allocation3], 0  ;;  %s728_s0 = inlined_call_operand.vmem [shape: f32[4,4], index: 0, kind: input, shape index: {}]   ;;  %s729_s1 = inlined_call_operand.vmem [shape: f32[4,1], index: 1, kind: input, shape index: {}]   ;;  %s730_s2 = inlined_call_operand.hbm [shape: f32[2,4,256], index: 2, kind: input, shape index: {}]   ;;  %s731_s3 = inlined_call_operand.hbm [shape: f32[2,4,256], index: 3, kind: output, shape index: {}]  }
   0x1   :  { %10 = vsyncpa [#allocation3 + $0x1], 0 }
   0x2   :  { %11 = vsyncpa [#allocation4], 0 }
   0x3   :  { %13 = vsyncpa [#allocation4 + $0x1], 0  ;;  %s599_s12 = smov 0   ;;  %s601_s13 = smov 0  }
   0x4   :  { %s603_s14 = smov 0   ;;  %s605_s15 = smov 0  }
   0x5   :  { %s607_s16 = smov 0   ;;  %s609_s17 = smov 0  }
   0x6 LB: > { %s379_s18 = sadd.s32 4294967295, %s576_s17   ;;  %s380_s19 = sadd.s32 4294967294, %s576_s17   ;;  %s576_s17 = sphi %s609_s17, %s19_s17   ;;  %s572_s16 = sphi %s607_s16, %s740_s16   ;;  %s568_s15 = sphi %s605_s15, %s739_s15   ;;  %s564_s14 = sphi %s603_s14, %s738_s14   ;;  %s560_s13 = sphi %s601_s13, %s737_s13   ;;  %s556_s12 = sphi %s599_s12, %s736_s12  }
   0x7   : > { %s31_s20 = sadd.s32 1, %s572_s16  ;;  %s82_s21 = sadd.s32 1, %s564_s14 }
   0x8   : > { %p33_p0 = scmp.ge.s32.totalorder %s31_s20, 2  ;;  %p89_p1 = scmp.ne.s32.totalorder %s564_s14, %s560_s13 }
   0x9   : > { %p90_p2 = scmp.eq.s32.totalorder %s576_s17, 0  ;;  %p95_p3 = scmp.ne.s32.totalorder %s560_s13, %s556_s12 }
   0xa   : > { %s742_s20 = smov (%p33_p0, %s31_s20), 0  ;;  %p96_p5 = scmp.eq.s32.totalorder %s379_s18, 0 }
   0xb   : > { %p640_p4 = por %p90_p2, %p89_p1  ;;  %s77_s23 = ssub.s32 %s572_s16, %s742_s20 }
   0xc   : > { %p121_p6 = scmp.eq.s32.totalorder %s379_s18, 1  ;;  %p80_p7 = scmp.eq.s32.totalorder %s77_s23, 0 }
   0xd   : > { %p646_p8 = por %p96_p5, %p95_p3  ;;  %p127_p10 = scmp.eq.s32.totalorder %s380_s19, 1 }
   0xe   : > { %p650_p9 = por %p121_p6, %p89_p1  ;;  %p382_p12 = scmp.ge.s32.totalorder %s576_s17, 2 }
   0xf   : > { %s655_s26 = scalar_select %p80_p7, %s564_s14, %s82_s21  }
  0x10   : > { %p657_p11 = por %p127_p10, %p95_p3  ;;  %p412_p13 = scmp.lt.s32.totalorder %s576_s17, 2 }
  0x11   : > { %s153_s28 = sand.u32 1, %s564_s14   ;;  %s398_s30 = sshll.u32 %s572_s16, 3 }
  0x12   : > { %s383_s29 = sshll.u32 %s153_s28, 3  ;;  %s164_s6 = scalar_lea.hbm %s730_s2, %s398_s30 }
  0x13   : > { %s157_s7 = scalar_lea.vmem [#allocation2], %s383_s29  ;;  %s166_s9 = sshll.u32 %s164_s6, 4  ;;  %s167_s9 = int_to_ptr.hbm [resolvable:$true] %s166_s9 }
  0x14   : > { %s168_s8 = sshll.u32 %s157_s7, 4  ;;  %p405_p0 = pnand %p412_p13, %p640_p4  ;;  %s169_s8 = int_to_ptr.vmem [resolvable:$true] %s168_s8 }
  0x15   : > { %p386_p1 = scmp.ge.s32.totalorder %s576_s17, 1  ;;  %p173_p2 = scmp.lt.s32.totalorder %s576_s17, 3 }
  0x16   : > { %s154_s10 = scalar_lea.sflag [#allocation3], %s153_s28 }
  0x17   : > { %407 = dma.hbm_to_vmem [thread:$0]  (!%p405_p0), %s167_s9, 128, %s169_s8, %s154_s10  }
  0x18   : > { %p174_p3 = pnand %p386_p1, %p173_p2 }
  0x19   : > { %s673_s11 = sand.u32 (!%p174_p3), 1, %s560_s13  }
  0x1a   : > { %177 = sbr.rel (%p174_p3) target bundleno = 176 (0xb0), region = 32  ;;  %s387_s18 = sshll.u32 (!%p174_p3), %s673_s11, 3 }
  0x1b   : > { %s180_s19 = scalar_lea.sflag (!%p174_p3), [#allocation3], %s673_s11  ;;  %s183_s21 = scalar_lea.vmem (!%p174_p3), [#allocation2], %s387_s18 }
  0x1f   : > { %547 = dma.done.wait (%p646_p8), %s180_s19, 128  }
  0x20   : > { %549 = vsyncadd (%p646_p8), %s180_s19, 4294967168  ;;  %v578_v0 = vmov 0   ;;  %v210_v1 = vld [vmem:[%s183_s21] sm:$0xff]  ;;  %v211_v2 = vld [vmem:[%s729_s1] sm:$0xf]  ;;  %vm225_vm0 = vcmask 1043456  }
  0x21   : > { %463 = vset.pattern.permute.xlu0 %v578_v0  ;;  %218 = vst [vmem:[#allocation1] ss:$2 sm:$0xff] %v210_v1  ;;  %v209_v3 = vld [vmem:[%s728_s0] sm:$0xf]  ;;  %vm221_vm1 = vcmask 31744   ;;  %s399_s24 = sshll.u32 %s568_s15, 3 }
  0x22   : > { %214 = vperm.xlu0 %463, %v211_v2   ;;  %s290_s5 = scalar_lea.hbm %s731_s3, %s399_s24  ;;  %s206_s6 = scalar_lea.vmem [#allocation5], %s387_s18 }
  0x23   : > { %s292_s7 = sshll.u32 %s206_s6, 4  ;;  %s294_s8 = sshll.u32 %s290_s5, 4  ;;  %s293_s7 = int_to_ptr.vmem [resolvable:$true] %s292_s7  ;;  %s295_s8 = int_to_ptr.hbm [resolvable:$true] %s294_s8 }
  0x24   : > { %s277_s15 = scalar_lea.sflag [#allocation4], %s673_s11  ;;  %s508_s9 = sshra.s32 %s295_s8, 4  ;;  %s509_s9 = int_to_ptr.hbm [resolvable:$true] %s508_s9 }
  0x25   : > { %s510_s10 = scalar_lea.hbm %s509_s9, 8  ;;  %s514_s18 = scalar_lea.hbm %s731_s3, 16 }
  0x26   : > { %p511_p4 = scmp.ne.s32.totalorder %s509_s9, %s510_s10  ;;  %p515_p7 = scmp.lt.s32.totalorder %s509_s9, %s731_s3 }
  0x27   : > { %p516_p8 = scmp.lt.s32.totalorder %s514_s18, %s510_s10 }
  0x28   : > { %v219_v4 = vld.sshfl [vmem:[#allocation1] sm:$0xff pattern:$0x75316420]  ;;  %v220_v5 = vld.sshfl [vmem:[#allocation1 + $0x8] sm:$0xff pattern:$0x75316420]  ;;  %p512_p5 = pnand %p511_p4, %p650_p9 }
  0x29   : > { %389 = vmatpush.msk.msra.mxu0 %vm225_vm0, %v219_v4  ;;  %391 = vmatpush.msk.msra.mxu1 %vm225_vm0, %v220_v5  ;;  %p517_p10 = por %p516_p8, %p515_p7 }
  0x2a   : > { %390 = vmatmul.msk.f32.vlgmr.msra.gmra.mxu0 %vm221_vm1, %v209_v3  ;;  %392 = vmatmul.msk.f32.vlgmr.msra.gmra.mxu1 %vm221_vm1, %v209_v3  ;;  %p513_p6 = pneg %p512_p5 }
  0x2c   : > { %p518_p13 = pnand %p517_p10, %p513_p6 }
  0x94   : > { %v215_v6 = vpop.permute.xlu0 %214 }
  0xa7   : > { %v247_v7 = vpop.f32.mrf.mxu0  ;;  %v267_v8 = vpop.f32.mrf.mxu1 }
  0xa8   : > { %v268_v9 = vadd.f32 %v267_v8, %v215_v6  ;;  %v248_v10 = vadd.f32 %v247_v7, %v215_v6 }
  0xaa   : > { %v272_v11 = vrot.slane %v268_v9, 4 }
  0xac   : > { %v273_v12 = vsel %vm225_vm0, %v248_v10, %v272_v11 }
  0xad   : > { %275 = vst [vmem:[%s206_s6] sm:$0xff] %v273_v12 }
  0xae   : > { %521 = shalt.err (!%p518_p13)
}
  0xaf   : > { %402 = dma.vmem_to_hbm [thread:$0]  (%p650_p9), %s293_s7, 128, %s295_s8, %s277_s15  }
  0xb0 PF: > { %s306_s11 = sand.u32 1, %s556_s12   ;;  %p409_p0 = pnand %p382_p12, %p657_p11 }
  0xb1   : > { %s307_s28 = scalar_lea.sflag [#allocation4], %s306_s11 }
  0xb2   : > { %p410_p1 = pneg %p409_p0 }
  0xb4   : > { %551 = dma.done.wait (%p410_p1), %s307_s28, 128  }
  0xb5   : > { %553 = vsyncadd (%p410_p1), %s307_s28, 4294967168  ;;  %s19_s17 = sadd.s32 1, %s576_s17   ;;  %s736_s12 = smov %s560_s13 }
  0xb6   : > { %p16_p2 = scmp.ge.s32.totalorder %s19_s17, 4   ;;  %s737_s13 = smov %s564_s14 }
  0xb7   : > { %s738_s14 = smov %s655_s26  ;;  %s739_s15 = smov %s572_s16 }
  0xb8   : > { %s740_s16 = smov %s742_s20  ;;  %18 = sbr.rel (!%p16_p2) target bundleno = 6 (0x6), region = 77 }
  0xbd   :  { %313 = vsyncpa [#allocation3], 1 }
  0xbe   :  { %315 = vsyncpa [#allocation3 + $0x1], 1 }
  0xbf   :  { %316 = vsyncpa [#allocation4], 1 }
  0xc0   :  { %318 = vsyncpa [#allocation4 + $0x1], 1 }

</bundles_post_ra>
